<compile_context>
chip_gen: v5e
topology: v5e:2x2
jax: 0.10.0
libtpu: 0.0.40
codegen_flags: <defaults>
</compile_context>

<pallas_src>
import functools

import jax
import jax.numpy as jnp
from jax.experimental import pallas as pl
from jax.experimental.pallas import tpu as pltpu


_VMEM_LIMIT_BYTES = 64 << 20  # raise scoped VMEM (defaults: 16 MiB v5e / 32 MiB v6e)


def _layernorm_kernel(x_ref, a_ref, b_ref, o_ref, *, eps, features):
    # x_ref: (tile_rows, F) -- normalize over the last (lane) axis.
    x = x_ref[...].astype(jnp.float32)
    a = a_ref[...].astype(jnp.float32)          # (1, F)
    b = b_ref[...].astype(jnp.float32)          # (1, F)

    inv_n = jnp.float32(1.0 / features)
    inv_nm1 = jnp.float32(1.0 / max(features - 1, 1))

    # Fused single pass: both reductions read x directly (independent XLU work).
    s = jnp.sum(x, axis=-1, keepdims=True)          # (tile_rows, 1)
    ss = jnp.sum(x * x, axis=-1, keepdims=True)     # (tile_rows, 1)
    mean = s * inv_n
    # PyTorch torch.std default: unbiased (divide by N-1).
    var = (ss - s * mean) * inv_nm1
    var = jnp.maximum(var, 0.0)                     # guard tiny negative from cancellation
    std = jnp.sqrt(var)

    denom = std + jnp.float32(eps)
    # One EUP reciprocal per row (separate VLIW slot) + one Newton step for
    # f32-accurate 1/denom, instead of F broadcast divides per row.
    inv = pl.reciprocal(denom, approx=True)
    inv = inv * (jnp.float32(2.0) - denom * inv)

    out = a * ((x - mean) * inv) + b
    o_ref[...] = out.astype(o_ref.dtype)


def _round_up(n, m):
    return (n + m - 1) // m * m


def _choose_tile_rows(rows, features, itemsize):
    # Sublane packing: f32 -> 8 rows/vreg, bf16 -> 16, int8/fp8 -> 32.
    sublane = max(8, 32 // max(itemsize, 1))
    # Double-buffered input + output blocks; budget to ~half the scoped limit
    # so the same tiling also fits v7x's 64 MiB VMEM with headroom.
    budget = _VMEM_LIMIT_BYTES // 2
    per_row = 4 * features * max(itemsize, 4)       # 2 bufs x (in + out), f32-width bound
    max_by_vmem = max(sublane, budget // per_row)
    tile = min(1024, max_by_vmem, _round_up(rows, sublane))
    tile = max(sublane, (tile // sublane) * sublane)
    # Prefer >=2 grid steps so the "parallel" axis can shard across 2 TCs (v7x).
    if _round_up(rows, tile) // tile < 2 and rows > sublane:
        half = _round_up(rows, 2 * sublane) // 2
        tile = max(sublane, (half // sublane) * sublane)
    return tile


def layer_norm(x, a_2, b_2, eps=1e-6, tile_rows=None):
    """x: (..., features).  a_2, b_2: (features,)."""
    orig_shape = x.shape
    features = orig_shape[-1]
    rows = 1
    for d in orig_shape[:-1]:
        rows *= d

    x2 = x.reshape(rows, features)
    a2 = a_2.reshape(1, features)
    b2 = b_2.reshape(1, features)

    if tile_rows is None:
        tile_rows = _choose_tile_rows(rows, features, jnp.dtype(x.dtype).itemsize)

    # Pad rows to a multiple of the tile so pipelining / megacore sharding keep
    # the optimal tile size regardless of shape (padded rows are sliced off).
    rows_padded = _round_up(rows, tile_rows)
    if rows_padded != rows:
        x2 = jnp.pad(x2, ((0, rows_padded - rows), (0, 0)))

    grid = (rows_padded // tile_rows,)

    # TODO(synk): for features < 128 (lane-sparse), a packed (rows, k, F) layout with
    # segmented reductions would avoid masked stores; not implemented here.
    kernel = functools.partial(_layernorm_kernel, eps=eps, features=features)
    out = pl.pallas_call(
        kernel,
        out_shape=jax.ShapeDtypeStruct((rows_padded, features), x.dtype),
        grid_spec=pltpu.PrefetchScalarGridSpec(
            num_scalar_prefetch=0,
            grid=grid,
            in_specs=[
                pl.BlockSpec((tile_rows, features), lambda i: (i, 0)),
                pl.BlockSpec((1, features), lambda i: (0, 0)),
                pl.BlockSpec((1, features), lambda i: (0, 0)),
            ],
            out_specs=pl.BlockSpec((tile_rows, features), lambda i: (i, 0)),
        ),
        compiler_params=pltpu.CompilerParams(
            dimension_semantics=("parallel",),
            vmem_limit_bytes=_VMEM_LIMIT_BYTES,
        ),
    )(x2, a2, b2)

    if rows_padded != rows:
        out = out[:rows]
    return out.reshape(orig_shape)


if __name__ == "__main__":
    key = jax.random.PRNGKey(0)
    batch, seq, hidden = 2, 8, 128   # hidden=128 -> lane-dense loads/stores

    x = jax.random.normal(key, (batch, seq, hidden), dtype=jnp.float32)
    # nn.Parameter(torch.ones(features)) / torch.zeros(features)
    a_2 = jnp.ones((hidden,), dtype=jnp.float32)
    b_2 = jnp.zeros((hidden,), dtype=jnp.float32)

    out = layer_norm(x, a_2, b_2, eps=1e-6)
    out = jax.block_until_ready(out)

    # Reference check (pure JAX, same math: unbiased std, eps added to std).
    mean = jnp.mean(x, axis=-1, keepdims=True)
    std = jnp.sqrt(jnp.sum((x - mean) ** 2, axis=-1, keepdims=True) / (hidden - 1))
    ref = a_2 * (x - mean) / (std + 1e-6) + b_2
    assert jnp.allclose(out, ref, atol=1e-4, rtol=1e-4), "mismatch vs reference"

    print("KERNEL_OK")
</pallas_src>

<mosaic_0001>
module attributes {stable_mosaic.version = 11 : i64} {
  func.func @_layernorm_kernel(%arg0: i32, %arg1: memref<8x128xf32, #tpu.memory_space<vmem>>, %arg2: memref<1x128xf32, #tpu.memory_space<vmem>>, %arg3: memref<1x128xf32, #tpu.memory_space<vmem>>, %arg4: memref<8x128xf32, #tpu.memory_space<vmem>>) attributes {dimension_semantics = [#tpu.dimension_semantics<parallel>], iteration_bounds = array<i64: 2>, scalar_prefetch = 0 : i64, scratch_operands = 0 : i64, tpu.core_type = #tpu.core_type<tc>, window_params = [{transform_indices = @transform_0, window_bounds = array<i64: 8, 128>}, {pipeline_mode = #tpu.pipeline_mode<synchronous>, transform_indices = @transform_1, window_bounds = array<i64: 1, 128>}, {pipeline_mode = #tpu.pipeline_mode<synchronous>, transform_indices = @transform_2, window_bounds = array<i64: 1, 128>}, {transform_indices = @transform_3, window_bounds = array<i64: 8, 128>}]} {
    %c0 = arith.constant 0 : index
    %c0_0 = arith.constant 0 : index
    %0 = vector.load %arg1[%c0, %c0_0] : memref<8x128xf32, #tpu.memory_space<vmem>>, vector<8x128xf32>
    %c0_1 = arith.constant 0 : index
    %c0_2 = arith.constant 0 : index
    %1 = vector.load %arg2[%c0_1, %c0_2] : memref<1x128xf32, #tpu.memory_space<vmem>>, vector<1x128xf32>
    %c0_3 = arith.constant 0 : index
    %c0_4 = arith.constant 0 : index
    %2 = vector.load %arg3[%c0_3, %c0_4] : memref<1x128xf32, #tpu.memory_space<vmem>>, vector<1x128xf32>
    %cst = arith.constant dense<0.000000e+00> : vector<8xf32>
    %3 = vector.multi_reduction <add>, %0, %cst [1] : vector<8x128xf32> to vector<8xf32>
    %4 = vector.shape_cast %3 : vector<8xf32> to vector<8x1xf32>
    %5 = arith.mulf %0, %0 : vector<8x128xf32>
    %cst_5 = arith.constant dense<0.000000e+00> : vector<8xf32>
    %6 = vector.multi_reduction <add>, %5, %cst_5 [1] : vector<8x128xf32> to vector<8xf32>
    %7 = vector.shape_cast %6 : vector<8xf32> to vector<8x1xf32>
    %cst_6 = arith.constant 7.812500e-03 : f32
    %8 = vector.broadcast %cst_6 : f32 to vector<8x1xf32>
    %9 = arith.mulf %4, %8 : vector<8x1xf32>
    %10 = arith.mulf %4, %9 : vector<8x1xf32>
    %11 = arith.subf %7, %10 : vector<8x1xf32>
    %cst_7 = arith.constant 0.00787401571 : f32
    %12 = vector.broadcast %cst_7 : f32 to vector<8x1xf32>
    %13 = arith.mulf %11, %12 : vector<8x1xf32>
    %cst_8 = arith.constant 0.000000e+00 : f32
    %14 = vector.broadcast %cst_8 : f32 to vector<8x1xf32>
    %15 = arith.maximumf %13, %14 : vector<8x1xf32>
    %16 = math.sqrt %15 : vector<8x1xf32>
    %cst_9 = arith.constant 9.99999997E-7 : f32
    %17 = vector.broadcast %cst_9 : f32 to vector<8x1xf32>
    %18 = arith.addf %16, %17 : vector<8x1xf32>
    %19 = tpu.reciprocal %18 {approx = true} : vector<8x1xf32> -> vector<8x1xf32>
    %20 = arith.mulf %18, %19 : vector<8x1xf32>
    %cst_10 = arith.constant 2.000000e+00 : f32
    %21 = vector.broadcast %cst_10 : f32 to vector<8x1xf32>
    %22 = arith.subf %21, %20 : vector<8x1xf32>
    %23 = arith.mulf %19, %22 : vector<8x1xf32>
    %24 = vector.broadcast %9 : vector<8x1xf32> to vector<8x128xf32>
    %25 = arith.subf %0, %24 : vector<8x128xf32>
    %26 = vector.broadcast %23 : vector<8x1xf32> to vector<8x128xf32>
    %27 = arith.mulf %25, %26 : vector<8x128xf32>
    %28 = vector.broadcast %1 : vector<1x128xf32> to vector<8x128xf32>
    %29 = arith.mulf %28, %27 : vector<8x128xf32>
    %30 = vector.broadcast %2 : vector<1x128xf32> to vector<8x128xf32>
    %31 = arith.addf %29, %30 : vector<8x128xf32>
    %c0_11 = arith.constant 0 : index
    %c0_12 = arith.constant 0 : index
    %32 = vector.load %arg4[%c0_11, %c0_12] : memref<8x128xf32, #tpu.memory_space<vmem>>, vector<8x128xf32>
    tpu.vector_store %arg4[%c0_11, %c0_12], %31 {strides = array<i32>} : memref<8x128xf32, #tpu.memory_space<vmem>>, vector<8x128xf32>,
    return
  }
  func.func @transform_0(%arg0: i32) -> (i32, i32) {
    %c0_i32 = arith.constant 0 : i32
    %c0_i32_0 = arith.constant 0 : i32
    return %arg0, %c0_i32 : i32, i32
  }
  func.func @transform_1(%arg0: i32) -> (i32, i32) {
    %c0_i32 = arith.constant 0 : i32
    %c0_i32_0 = arith.constant 0 : i32
    %c0_i32_1 = arith.constant 0 : i32
    return %c0_i32, %c0_i32_0 : i32, i32
  }
  func.func @transform_2(%arg0: i32) -> (i32, i32) {
    %c0_i32 = arith.constant 0 : i32
    %c0_i32_0 = arith.constant 0 : i32
    %c0_i32_1 = arith.constant 0 : i32
    return %c0_i32, %c0_i32_0 : i32, i32
  }
  func.func @transform_3(%arg0: i32) -> (i32, i32) {
    %c0_i32 = arith.constant 0 : i32
    %c0_i32_0 = arith.constant 0 : i32
    return %arg0, %c0_i32 : i32, i32
  }
}

</mosaic_0001>

<bundles_post_ra>
// kernel: tpu_custom_call.1
= control target key start
LH: loop header
LB: loop body
LE: loop exit
PB: predicated region body
PF: predicated region fallthrough
CT: control target
= control target key end

     0   :  { %8 = vsyncpa [#allocation3], 0  ;;  %s715_s0 = inlined_call_operand.hbm [shape: f32[16,128], index: 0, kind: input, shape index: {}]   ;;  %s716_s1 = inlined_call_operand.hbm [shape: f32[1,128], index: 1, kind: input, shape index: {}]   ;;  %s717_s2 = inlined_call_operand.vmem [shape: f32[1,128], index: 2, kind: input, shape index: {}]   ;;  %s718_s3 = inlined_call_operand.hbm [shape: f32[16,128], index: 3, kind: output, shape index: {}]  }
   0x1   :  { %10 = vsyncpa [#allocation3 + $0x1], 0 }
   0x2   :  { %11 = vsyncpa [#allocation6], 0 }
   0x3   :  { %12 = vsyncpa [#allocation4], 0 }
   0x4   :  { %14 = vsyncpa [#allocation4 + $0x1], 0  ;;  %s570_s12 = smov 0   ;;  %s572_s13 = smov 0  }
   0x5   :  { %s574_s14 = smov 0   ;;  %s576_s15 = smov 0  }
   0x6 LB: > { %s591_s16 = sadd.s32 4294967295, %s547_s15   ;;  %s340_s17 = sadd.s32 4294967294, %s547_s15   ;;  %s547_s15 = sphi %s576_s15, %s728_s15   ;;  %s543_s14 = sphi %s574_s14, %s727_s14   ;;  %s539_s13 = sphi %s572_s13, %s726_s13   ;;  %s535_s12 = sphi %s570_s12, %s725_s12  }
   0x7   : > { %p40_p0 = scmp.ne.s32.totalorder %s539_s13, %s535_s12  ;;  %p41_p1 = scmp.eq.s32.totalorder %s591_s16, 0 }
   0x8   : > { %p106_p2 = scmp.eq.s32.totalorder %s591_s16, 1  ;;  %p112_p3 = scmp.eq.s32.totalorder %s340_s17, 1 }
   0x9   : > { %p600_p4 = por %p41_p1, %p40_p0  ;;  %p341_p5 = scmp.ge.s32.totalorder %s547_s15, 1 }
   0xa   : > { %p605_p6 = por %p112_p3, %p40_p0  ;;  %p119_p7 = scmp.lt.s32.totalorder %s547_s15, 3 }
   0xb   : > { %s131_s22 = sshll.u32 %s716_s1, 4  ;;  %s549_s24 = smov [#allocation5]   ;;  %s132_s22 = int_to_ptr.hbm [resolvable:$true] %s131_s22 }
   0xc   : > { %p613_p8 = pnand %p341_p5, %p119_p7  ;;  %s133_s25 = sshll.u32 %s549_s24, 4  ;;  %s134_s25 = int_to_ptr.vmem [resolvable:$true] %s133_s25 }
   0xd   : > { %s623_s26 = sadd.s32 1, %s547_s15   ;;  %s27_s27 = sadd.s32 1, %s543_s14 }
   0xe   : > { %p362_p10 = pneg %p613_p8  ;;  %s24_s28 = ssub.s32 %s547_s15, %s623_s26 }
   0xf   : > { %p25_p12 = scmp.eq.s32.totalorder %s24_s28, 0  ;;  %p34_p13 = scmp.ne.s32.totalorder %s543_s14, %s539_s13 }
  0x10   : > { %p363_p11 = pnand %p362_p10, %p41_p1  ;;  %p35_p0 = scmp.eq.s32.totalorder %s547_s15, 0 }
  0x11   : > { %s632_s29 = scalar_select %p25_p12, %s543_s14, %s27_s27  }
  0x12   : > { %365 = dma.hbm_to_vmem [thread:$0]  (!%p363_p11), %s132_s22, 16, %s134_s25, [#allocation6]  }
  0x13   : > { %p636_p3 = por %p106_p2, %p34_p13  ;;  %p375_p5 = scmp.lt.s32.totalorder %s547_s15, 2 }
  0x14   : > { %s147_s4 = sand.u32 1, %s543_s14   ;;  %s345_s5 = sshll.u32 %s547_s15, 3 }
  0x15   : > { %p36_p7 = por %p35_p0, %p34_p13  ;;  %s344_s6 = sshll.u32 %s147_s4, 3 }
  0x16   : > { %s155_s9 = scalar_lea.hbm %s715_s0, %s345_s5  ;;  %s151_s11 = scalar_lea.vmem [#allocation2], %s344_s6 }
  0x17   : > { %s157_s10 = sshll.u32 %s155_s9, 4  ;;  %s159_s17 = sshll.u32 %s151_s11, 4  ;;  %s158_s10 = int_to_ptr.hbm [resolvable:$true] %s157_s10  ;;  %s160_s17 = int_to_ptr.vmem [resolvable:$true] %s159_s17 }
  0x18   : > { %p646_p10 = pnand %p375_p5, %p36_p7  ;;  %s148_s21 = scalar_lea.sflag [#allocation3], %s147_s4 }
  0x19   : > { %s447_s22 = sshra.s32 %s158_s10, 4  ;;  %s454_s28 = scalar_lea.hbm %s715_s0, 16  ;;  %s448_s22 = int_to_ptr.hbm [resolvable:$true] %s447_s22 }
  0x1a   : > { %s449_s24 = scalar_lea.hbm %s448_s22, 8  ;;  %p451_p11 = pneg %p646_p10 }
  0x1b   : > { %p450_p2 = scmp.ne.s32.totalorder %s448_s22, %s449_s24  ;;  %p455_p0 = scmp.lt.s32.totalorder %s448_s22, %s715_s0 }
  0x1c   : > { %p456_p5 = scmp.lt.s32.totalorder %s454_s28, %s449_s24 }
  0x1d   : > { %p452_p12 = pnand %p451_p11, %p450_p2 }
  0x1e   : > { %p457_p7 = por %p456_p5, %p455_p0 }
  0x1f   : > { %p453_p13 = pneg %p452_p12 }
  0x21   : > { %p458_p9 = pnand %p457_p7, %p453_p13 }
  0x23   : > { %461 = shalt.err (!%p458_p9)
}
  0x24   : > { %369 = dma.hbm_to_vmem [thread:$0]  (!%p646_p10), %s158_s10, 128, %s160_s17, %s148_s21  }
  0x25   : > { %168 = sbr.rel (%p613_p8) target bundleno = 221 (0xdd), region = 32  ;;  %s663_s4 = sand.u32 (!%p613_p8), 1, %s539_s13  }
  0x26   : > { %s347_s7 = sshll.u32 (!%p613_p8), %s663_s4, 3  ;;  %s171_s8 = scalar_lea.sflag (!%p613_p8), [#allocation3], %s663_s4 }
  0x27   : > { %s174_s9 = scalar_lea.vmem (!%p613_p8), [#allocation2], %s347_s7 }
  0x2a   : > { %522 = dma.done.wait (%p600_p4), %s171_s8, 128  }
  0x2b   : > { %524 = vsyncadd (%p600_p4), %s171_s8, 4294967168 }
  0x2c   : > { %526 = dma.done.wait (%p41_p1), [#allocation6], 16  }
  0x2d   : > { %528 = vsyncadd (%p41_p1), [#allocation6], 4294967280  ;;  %v203_v0 = vld [vmem:[%s174_s9] sm:$0xff]  ;;  %s351_s18 = sshll.u32 %s591_s16, 3  ;;  %v411_v25 = vld [vmem:[#allocation5] ss:$0 sm:$0xff] }
  0x2e   : > { %206 = vadd.xlane.f32.xlu0 %v203_v0  ;;  %v208_v1 = vmul.f32 %v203_v0, %v203_v0  ;;  %s255_s11 = scalar_lea.hbm %s718_s3, %s351_s18  ;;  %v412_v27 = vld [vmem:[%s717_s2] ss:$0 sm:$0xff]  ;;  %s202_s21 = scalar_lea.vmem [#allocation7], %s347_s7 }
  0x2f   : > { %s257_s22 = sshll.u32 %s202_s21, 4  ;;  %s259_s24 = sshll.u32 %s255_s11, 4  ;;  %s258_s22 = int_to_ptr.vmem [resolvable:$true] %s257_s22  ;;  %s260_s24 = int_to_ptr.hbm [resolvable:$true] %s259_s24 }
  0x30   : > { %s245_s16 = scalar_lea.sflag [#allocation4], %s663_s4  ;;  %s491_s25 = sshra.s32 %s260_s24, 4  ;;  %s492_s25 = int_to_ptr.hbm [resolvable:$true] %s491_s25 }
  0x31   : > { %s493_s27 = scalar_lea.hbm %s492_s25, 8  ;;  %s497_s6 = scalar_lea.hbm %s718_s3, 16 }
  0x32   : > { %p494_p1 = scmp.ne.s32.totalorder %s492_s25, %s493_s27  ;;  %p498_p9 = scmp.lt.s32.totalorder %s492_s25, %s718_s3 }
  0x33   : > { %p499_p10 = scmp.lt.s32.totalorder %s497_s6, %s493_s27 }
  0x34   : > { %p495_p4 = pnand %p494_p1, %p636_p3 }
  0x35   : > { %p500_p2 = por %p499_p10, %p498_p9 }
  0x36   : > { %209 = vadd.xlane.f32.xlu0 %v208_v1  ;;  %p496_p8 = pneg %p495_p4 }
  0x38   : > { %p501_p11 = pnand %p500_p2, %p496_p8 }
  0xa1   : > { %v207_v2 = vpop.xlane.xlu0 %206 }
  0xa2   : > { %v211_v3 = vmul.f32 0.0078125, %v207_v2 }
  0xa4   : > { %v212_v4 = vmul.f32 %v211_v3, %v207_v2  ;;  %v233_v23 = vsub.f32 %v203_v0, %v211_v3 }
  0xa9   : > { %v210_v5 = vpop.xlane.xlu0 %209 }
  0xaa   : > { %v213_v6 = vsub.f32 %v210_v5, %v212_v4 }
  0xac   : > { %v214_v7 = vmul.f32 0.007874016, %v213_v6 }
  0xae   : > { %v215_v8 = vmax.f32 %v214_v7, 0.0 }
  0xb0   : > { %413 = vrsqrt.f32 %v215_v8  ;;  %vm223_vm0 = vcmp.eq.f32.partialorder %v215_v8, inf  ;;  %v226_v16 = vand.u32 2147483648, %v215_v8  ;;  %vm225_vm1 = vcmp.eq.f32.partialorder %v215_v8, 0.0 }
  0xb6   : > { %v414_v9 = vpop.eup %413 }
  0xb7   : > { %v217_v10 = vmul.f32 %v414_v9, %v215_v8 }
  0xb9   : > { %v218_v11 = vmul.f32 %v414_v9, %v217_v10 }
  0xbb   : > { %v219_v12 = vmul.f32 0.5, %v218_v11 }
  0xbd   : > { %v220_v13 = vsub.f32 1.5, %v219_v12 }
  0xbf   : > { %v221_v14 = vmul.f32 %v414_v9, %v220_v13 }
  0xc1   : > { %v222_v15 = vmul.f32 %v221_v14, %v215_v8 }
  0xc3   : > { %v224_v17 = vsel %vm223_vm0, %v215_v8, %v222_v15 }
  0xc4   : > { %v227_v18 = vsel %vm225_vm1, %v226_v16, %v224_v17 }
  0xc5   : > { %v228_v19 = vadd.f32 1e-06, %v227_v18 }
  0xc7   : > { %415 = vrcp.f32 %v228_v19 }
  0xcd   : > { %v416_v20 = vpop.eup %415 }
  0xce   : > { %v230_v21 = vmul.f32 %v416_v20, %v228_v19 }
  0xd0   : > { %v231_v22 = vsub.f32 2.0, %v230_v21 }
  0xd2   : > { %v232_v24 = vmul.f32 %v416_v20, %v231_v22 }
  0xd4   : > { %v234_v26 = vmul.f32 %v233_v23, %v232_v24 }
  0xd6   : > { %v238_v28 = vmul.f32 %v411_v25, %v234_v26 }
  0xd8   : > { %v242_v29 = vadd.f32 %v412_v27, %v238_v28 }
  0xda   : > { %243 = vst [vmem:[%s202_s21] sm:$0xff] %v242_v29 }
  0xdb   : > { %504 = shalt.err (!%p501_p11)
}
  0xdc   : > { %360 = dma.vmem_to_hbm [thread:$0]  (%p636_p3), %s258_s22, 128, %s260_s24, %s245_s16  }
  0xdd PF: > { %s271_s4 = sand.u32 1, %s535_s12   ;;  %p724_p12 = scmp.ge.s32.totalorder %s547_s15, 2 }
  0xde   : > { %s272_s9 = scalar_lea.sflag [#allocation4], %s271_s4 }
  0xdf   : > { %p371_p13 = pnand %p724_p12, %p605_p6 }
  0xe1   : > { %p372_p0 = pneg %p371_p13 }
  0xe3   : > { %530 = dma.done.wait (%p372_p0), %s272_s9, 128  }
  0xe4   : > { %532 = vsyncadd (%p372_p0), %s272_s9, 4294967168  ;;  %p17_p5 = scmp.ge.s32.totalorder %s623_s26, 4   ;;  %s725_s12 = smov %s539_s13 }
  0xe5   : > { %s726_s13 = smov %s543_s14  ;;  %s727_s14 = smov %s632_s29 }
  0xe6   : > { %s728_s15 = smov %s623_s26  ;;  %19 = sbr.rel (!%p17_p5) target bundleno = 6 (0x6), region = 81 }
  0xeb   :  { %278 = vsyncpa [#allocation3], 1 }
  0xec   :  { %280 = vsyncpa [#allocation3 + $0x1], 1 }
  0xed   :  { %281 = vsyncpa [#allocation6], 1 }
  0xee   :  { %282 = vsyncpa [#allocation4], 1 }
  0xef   :  { %284 = vsyncpa [#allocation4 + $0x1], 1 }

</bundles_post_ra>
